<compile_context>
chip_gen: v7x
topology: tpu7x:2x2x1
jax: 0.10.0
libtpu: 0.0.40
codegen_flags: <defaults>
</compile_context>

<pallas_src>
import functools

import jax
import jax.numpy as jnp
import numpy as np
from jax import lax
from jax.experimental import pallas as pl
from jax.experimental.pallas import tpu as pltpu

_LANE = 128
_ACC_ROWS = 64            # widened VPU accumulator: 8 independent f32 vregs
_CHUNK_ROWS = 512         # rows per inner-loop step (256 KiB f32 per operand)
_SMALL_MAX_ROWS = 4096    # <= 2 MiB per input -> single-shot, no pipelining
_TINY_BYPASS_ELEMS = 4096  # below this, pallas_call launch overhead dominates


@functools.lru_cache(maxsize=1)
def _tiled_config():
    """Per-generation streaming tile: bigger blocks on 128-MiB-VMEM parts."""
    block_rows, vmem_limit = 8192, 32 * 1024 * 1024       # safe on v5e/v6e/v7x
    try:
        info = pltpu.get_tpu_info()
        vmem_cap = getattr(info, "vmem_capacity_bytes", 0) or 0
        if vmem_cap >= 96 * 1024 * 1024:                   # v5e / v6e (128 MiB)
            block_rows, vmem_limit = 16384, 64 * 1024 * 1024
    except Exception:
        pass  # unknown part -> conservative defaults (fit v7x's 64 MiB VMEM)
    return block_rows, vmem_limit


def _rmse_single_kernel(yh_ref, y_ref, out_ref):
    """Whole (small) problem in one block: emit sum of squared errors."""
    d = yh_ref[...].astype(jnp.float32) - y_ref[...].astype(jnp.float32)
    out_ref[0, 0] = jnp.sum(d * d)


def _rmse_tiled_kernel(yh_ref, y_ref, out_ref, acc_ref, *,
                       block_rows, blocks_per_core, n_blocks, rows_valid):
    """Streaming sum-of-squares over (block_rows, 128) tiles, 2-core split.

    Grid = (2, blocks_per_core).  Axis 0 is the (mega)core split ("parallel");
    axis 1 is the serial reduction axis within each core's half of the rows.
    Each core writes its own (64, 128) partial-sum slab; the wrapper combines.
    """
    c = pl.program_id(0)                 # core id (parallel axis)
    i = pl.program_id(1)                 # block index within this core's range
    blk = c * blocks_per_core + i        # un-clamped global block index

    @pl.when(i == 0)
    def _():
        acc_ref[...] = jnp.zeros_like(acc_ref)

    n_chunks = block_rows // _CHUNK_ROWS
    full_blocks = rows_valid // block_rows   # blocks fully inside valid data

    def accumulate(masked):
        def body(j, carry):
            r0 = pl.multiple_of(j * _CHUNK_ROWS, _CHUNK_ROWS)
            d = (yh_ref[pl.ds(r0, _CHUNK_ROWS), :].astype(jnp.float32)
                 - y_ref[pl.ds(r0, _CHUNK_ROWS), :].astype(jnp.float32))
            sq = d * d
            if masked:
                # Only tail / out-of-range blocks ever take this branch; zero
                # rows past the real data (select does not propagate garbage).
                row = (blk * block_rows + r0
                       + lax.broadcasted_iota(jnp.int32, sq.shape, 0))
                sq = jnp.where(row < rows_valid, sq, jnp.float32(0.0))
            # Pure-VPU accumulation into 8 independent (8,128) vreg chains.
            acc_ref[...] += sq.reshape(
                _CHUNK_ROWS // _ACC_ROWS, _ACC_ROWS, _LANE).sum(axis=0)
            return carry

        lax.fori_loop(0, n_chunks, body, 0)

    needs_mask = (rows_valid % block_rows != 0) or (2 * blocks_per_core != n_blocks)
    if needs_mask:
        @pl.when(blk < full_blocks)
        def _():
            accumulate(masked=False)

        @pl.when(blk >= full_blocks)
        def _():
            accumulate(masked=True)
    else:
        accumulate(masked=False)

    @pl.when(i == pl.num_programs(1) - 1)
    def _():
        out_ref[0, :, :] = acc_ref[...]


def rmse_loss(x, y_hat, y, w, A, B, C):
    """Pallas implementation of RMSELoss.forward (add_abc=False, add_weights=False)."""
    del x, w, A, B, C  # unused in this hyperparameter branch

    n = int(np.prod(y_hat.shape))   # static shapes: baked at trace time
    yh = y_hat.reshape(-1)
    yy = y.reshape(-1)

    # Tiny inputs: launch overhead >> work; plain XLA is strictly faster.
    if n <= _TINY_BYPASS_ELEMS:
        d = yh.astype(jnp.float32) - yy.astype(jnp.float32)
        return jnp.sqrt(jnp.sum(d * d) / jnp.float32(n))

    # 128-aligned prefix goes through the kernel (free reshape, no pad copy);
    # the <128-element ragged tail is reduced by a trivial wrapper-side op.
    rows = n // _LANE
    aligned = rows * _LANE
    tail_sq = jnp.float32(0.0)
    if aligned < n:
        dt = yh[aligned:].astype(jnp.float32) - yy[aligned:].astype(jnp.float32)
        tail_sq = jnp.sum(dt * dt)

    yh2 = yh[:aligned].reshape(rows, _LANE)
    yy2 = yy[:aligned].reshape(rows, _LANE)

    if rows <= _SMALL_MAX_ROWS:
        # Single full-array block (block == array shape, exempt from the
        # (8,128) divisibility rule), one grid step, no scratch.
        ssum = pl.pallas_call(
            _rmse_single_kernel,
            out_shape=jax.ShapeDtypeStruct((1, 1), jnp.float32),
            grid_spec=pltpu.PrefetchScalarGridSpec(
                num_scalar_prefetch=0,
                grid=(1,),
                in_specs=[
                    pl.BlockSpec((rows, _LANE), lambda i: (0, 0)),
                    pl.BlockSpec((rows, _LANE), lambda i: (0, 0)),
                ],
                out_specs=pl.BlockSpec(memory_space=pltpu.SMEM),
            ),
            compiler_params=pltpu.CompilerParams(
                vmem_limit_bytes=32 * 1024 * 1024),
        )(yh2, yy2)
        main_sq = ssum[0, 0]
    else:
        block_rows, vmem_limit = _tiled_config()
        n_blocks = pl.cdiv(rows, block_rows)
        bpc = pl.cdiv(n_blocks, 2)   # blocks per core (leading parallel axis)

        def in_map(c, i):
            # Clamp so the (at most one) duplicated out-of-range block of the
            # second core reads valid HBM; its contribution is masked to zero.
            return (jnp.minimum(c * bpc + i, n_blocks - 1), 0)

        out = pl.pallas_call(
            functools.partial(
                _rmse_tiled_kernel,
                block_rows=block_rows, blocks_per_core=bpc,
                n_blocks=n_blocks, rows_valid=rows),
            out_shape=jax.ShapeDtypeStruct((2, _ACC_ROWS, _LANE), jnp.float32),
            grid_spec=pltpu.PrefetchScalarGridSpec(
                num_scalar_prefetch=0,
                grid=(2, bpc),
                in_specs=[
                    pl.BlockSpec((block_rows, _LANE), in_map),
                    pl.BlockSpec((block_rows, _LANE), in_map),
                ],
                out_specs=pl.BlockSpec((1, _ACC_ROWS, _LANE),
                                       lambda c, i: (c, 0, 0)),
                scratch_shapes=[pltpu.VMEM((_ACC_ROWS, _LANE), jnp.float32)],
            ),
            compiler_params=pltpu.CompilerParams(
                # Core-split axis parallel; reduction axis serial (acc carry).
                dimension_semantics=("parallel", "arbitrary"),
                vmem_limit_bytes=vmem_limit,
            ),
        )(yh2, yy2)
        # Per-core partial sums are combined BEFORE the division and sqrt.
        main_sq = jnp.sum(out)

    return jnp.sqrt((main_sq + tail_sq) / jnp.float32(n))


if __name__ == "__main__":
    key = jax.random.PRNGKey(0)
    kx, kyh, ky, kw, k2a, k2b, k3a, k3b = jax.random.split(key, 8)

    A = jnp.float32(0.1)
    Bc = jnp.float32(0.2)
    C = jnp.float32(0.3)

    # --- shipped shape: batch=256 (tiny -> launch-overhead bypass path) ---
    batch = 256  # matches hyperparams batch_size
    x = jax.random.normal(kx, (batch, 5), dtype=jnp.float32)       # net input (5 features)
    y_hat = jax.random.normal(kyh, (batch, 1), dtype=jnp.float32)  # network prediction
    y = jax.random.normal(ky, (batch, 1), dtype=jnp.float32)       # target
    w = jax.random.uniform(kw, (batch, 1), dtype=jnp.float32)      # sample weights (unused branch)

    loss = jax.block_until_ready(rmse_loss(x, y_hat, y, w, A, Bc, C))
    ref = jnp.sqrt(jnp.mean((y_hat - y) ** 2))
    assert np.allclose(np.asarray(loss), np.asarray(ref), rtol=1e-5, atol=1e-6), (
        float(loss), float(ref))

    # --- medium size: single-shot Pallas path + ragged <128 tail ---
    n_med = 300 * 128 + 17
    yh_med = jax.random.normal(k2a, (n_med, 1), dtype=jnp.float32)
    y_med = jax.random.normal(k2b, (n_med, 1), dtype=jnp.float32)
    loss_med = jax.block_until_ready(rmse_loss(None, yh_med, y_med, None, A, Bc, C))
    ref_med = jnp.sqrt(jnp.mean((yh_med - y_med) ** 2))
    assert np.allclose(np.asarray(loss_med), np.asarray(ref_med), rtol=1e-5, atol=1e-6), (
        float(loss_med), float(ref_med))

    # --- larger size: tiled streaming path with the 2-core split, partial
    #     last block, (possibly) a duplicated masked block, and ragged tail ---
    n_big = (2 * 8192 + 5000) * 128 + 7
    yh_big = jax.random.normal(k3a, (n_big, 1), dtype=jnp.float32)
    y_big = jax.random.normal(k3b, (n_big, 1), dtype=jnp.float32)
    loss_big = jax.block_until_ready(rmse_loss(None, yh_big, y_big, None, A, Bc, C))
    ref_big = jnp.sqrt(jnp.mean((yh_big - y_big) ** 2))
    assert np.allclose(np.asarray(loss_big), np.asarray(ref_big), rtol=1e-4, atol=1e-6), (
        float(loss_big), float(ref_big))

    print("KERNEL_OK")
</pallas_src>

<mosaic_0001>
module attributes {stable_mosaic.version = 11 : i64} {
  func.func @_rmse_single_kernel(%arg0: i32, %arg1: memref<300x128xf32, #tpu.memory_space<vmem>>, %arg2: memref<300x128xf32, #tpu.memory_space<vmem>>, %arg3: memref<1x1xf32, #tpu.memory_space<smem>>) attributes {dimension_semantics = [#tpu.dimension_semantics<arbitrary>], iteration_bounds = array<i64: 1>, scalar_prefetch = 0 : i64, scratch_operands = 0 : i64, tpu.core_type = #tpu.core_type<tc>, window_params = [{pipeline_mode = #tpu.pipeline_mode<synchronous>, transform_indices = @transform_0, window_bounds = array<i64: 300, 128>}, {pipeline_mode = #tpu.pipeline_mode<synchronous>, transform_indices = @transform_1, window_bounds = array<i64: 300, 128>}, {transform_indices = @transform_2, window_bounds = array<i64: 1, 1>}]} {
    %c0 = arith.constant 0 : index
    %c0_0 = arith.constant 0 : index
    %0 = vector.load %arg1[%c0, %c0_0] : memref<300x128xf32, #tpu.memory_space<vmem>>, vector<300x128xf32>
    %c0_1 = arith.constant 0 : index
    %c0_2 = arith.constant 0 : index
    %1 = vector.load %arg2[%c0_1, %c0_2] : memref<300x128xf32, #tpu.memory_space<vmem>>, vector<300x128xf32>
    %2 = arith.subf %0, %1 : vector<300x128xf32>
    %3 = arith.mulf %2, %2 : vector<300x128xf32>
    %4 = vector.shape_cast %3 : vector<300x128xf32> to vector<1x300x128xf32>
    %cst = arith.constant dense<0.000000e+00> : vector<1xf32>
    %5 = vector.multi_reduction <add>, %4, %cst [1, 2] : vector<1x300x128xf32> to vector<1xf32>
    %6 = vector.shape_cast %5 : vector<1xf32> to vector<1x1x1xf32>
    %7 = vector.extract %6[0, 0, 0] : f32 from vector<1x1x1xf32>
    %c0_3 = arith.constant 0 : index
    %c0_4 = arith.constant 0 : index
    %8 = memref.load %arg3[%c0_3, %c0_4] : memref<1x1xf32, #tpu.memory_space<smem>>
    memref.store %7, %arg3[%c0_3, %c0_4] : memref<1x1xf32, #tpu.memory_space<smem>>
    return
  }
  func.func @transform_0(%arg0: i32) -> (i32, i32) {
    %c0_i32 = arith.constant 0 : i32
    %c0_i32_0 = arith.constant 0 : i32
    %c0_i32_1 = arith.constant 0 : i32
    return %c0_i32, %c0_i32_0 : i32, i32
  }
  func.func @transform_1(%arg0: i32) -> (i32, i32) {
    %c0_i32 = arith.constant 0 : i32
    %c0_i32_0 = arith.constant 0 : i32
    %c0_i32_1 = arith.constant 0 : i32
    return %c0_i32, %c0_i32_0 : i32, i32
  }
  func.func @transform_2(%arg0: i32) -> (i32, i32) {
    %c0_i32 = arith.constant 0 : i32
    %c0_i32_0 = arith.constant 0 : i32
    %c0_i32_1 = arith.constant 0 : i32
    return %c0_i32, %c0_i32_0 : i32, i32
  }
}

</mosaic_0001>

<bundles_post_ra>
// kernel: tpu_custom_call.1
= control target key start
LH: loop header
LB: loop body
LE: loop exit
PB: predicated region body
PF: predicated region fallthrough
CT: control target
= control target key end

     0   :  { %7 = vsyncpa [#allocation3], 0  ;;  %s380_s0 = inlined_call_operand.hbm [shape: f32[300,128], index: 0, kind: input, shape index: {}]   ;;  %s381_s1 = inlined_call_operand.hbm [shape: f32[300,128], index: 1, kind: input, shape index: {}]   ;;  %s382_s2 = inlined_call_operand.hbm [shape: f32[1,1], index: 2, kind: output, shape index: {}]  }
   0x1   :  { %8 = vsyncpa [#allocation6], 0 }
   0x2   :  { %9 = vsyncpa [#allocation4], 0  ;;  %s324_s9 = smov [#allocation2]   ;;  %s264_s13 = scalar_lea.hbm %s380_s0, 4864 }
   0x3   :  { %s15_s10 = sshll.u32 %s324_s9, 4  ;;  %p265_p0 = scmp.ne.s32.totalorder %s380_s0, %s264_s13  ;;  %s16_s10 = int_to_ptr.vmem [resolvable:$true] %s15_s10 }
   0x4   :  { %p268_p1 = scmp.lt.u32.totalorder %s264_s13, %s380_s0 }
   0x6   :  { %p270_p2 = pnand %p268_p1, %p265_p0 }
   0x8   :  { %273 = shalt.err (!%p270_p2)
}
   0x9   :  { %s274_s18 = scalar_lea.vmem %s16_s10, 4864  ;;  %p279_p4 = scmp.lt.s32.totalorder %s16_s10, %s16_s10 }
   0xa   :  { %p275_p3 = scmp.ne.s32.totalorder %s16_s10, %s274_s18  ;;  %p280_p5 = scmp.lt.s32.totalorder %s274_s18, %s274_s18 }
   0xc   :  { %p281_p6 = por %p280_p5, %p279_p4 }
   0xe   :  { %p282_p7 = pnand %p281_p6, %p275_p3 }
  0x10   :  { %285 = shalt.err (!%p282_p7)
}
  0x11   :  { %s325_s19 = smov 128   ;;  %s326_s20 = smov 8  }
  0x12   :  { %21 = dma.hbm_to_vmem [thread:$0]  %s380_s0, 4864, %s16_s10, [#allocation3], %s325_s19, %s325_s19, %s326_s20  }
  0x13   :  { %s327_s23 = smov [#allocation5]   ;;  %s286_s27 = scalar_lea.hbm %s381_s1, 4864 }
  0x14   :  { %s27_s24 = sshll.u32 %s327_s23, 4  ;;  %p287_p8 = scmp.ne.s32.totalorder %s381_s1, %s286_s27  ;;  %s28_s24 = int_to_ptr.vmem [resolvable:$true] %s27_s24 }
  0x15   :  { %p290_p9 = scmp.lt.u32.totalorder %s286_s27, %s381_s1 }
  0x17   :  { %p292_p10 = pnand %p290_p9, %p287_p8 }
  0x19   :  { %295 = shalt.err (!%p292_p10)
}
  0x1a   :  { %s296_s4 = scalar_lea.vmem %s28_s24, 4864  ;;  %p301_p12 = scmp.lt.s32.totalorder %s28_s24, %s28_s24 }
  0x1b   :  { %p297_p11 = scmp.ne.s32.totalorder %s28_s24, %s296_s4  ;;  %p302_p13 = scmp.lt.s32.totalorder %s296_s4, %s296_s4 }
  0x1d   :  { %p303_p0 = por %p302_p13, %p301_p12 }
  0x1f   :  { %p304_p1 = pnand %p303_p0, %p297_p11 }
  0x21   :  { %307 = shalt.err (!%p304_p1)
}
  0x22   :  { %33 = dma.hbm_to_vmem [thread:$0]  %s381_s1, 4864, %s28_s24, [#allocation6], %s325_s19, %s325_s19, %s326_s20  }
  0x23   :  { %318 = dma.done.wait [#allocation3], 4864  }
  0x24   :  { %319 = vsyncadd [#allocation3], 4294962432 }
  0x25   :  { %320 = dma.done.wait [#allocation6], 4864  }
  0x26   :  { %321 = vsyncadd [#allocation6], 4294962432  ;;  %v40_v0 = vld [vmem:[#allocation2] sm:$0xff]  ;;  %v41_v1 = vld [vmem:[#allocation2 + $0x8] sm:$0xff]  ;;  %vm228_vm0 = vcmask 1043456   ;;  %s308_s8 = scalar_lea.hbm %s382_s2, 16 }
  0x27   :  { %v78_v2 = vld [vmem:[#allocation5] sm:$0xff]  ;;  %v79_v3 = vld [vmem:[#allocation5 + $0x8] sm:$0xff]  ;;  %v80_v5 = vld [vmem:[#allocation5 + $0x10] sm:$0xff]  ;;  %p309_p2 = scmp.ne.s32.totalorder %s382_s2, %s308_s8  ;;  %p312_p3 = scmp.lt.u32.totalorder %s308_s8, %s382_s2 }
  0x28   :  { %v42_v4 = vld [vmem:[#allocation2 + $0x10] sm:$0xff]  ;;  %v116_v6 = vsub.f32 %v40_v0, %v78_v2  ;;  %v117_v7 = vsub.f32 %v41_v1, %v79_v3  ;;  %v43_v8 = vld [vmem:[#allocation2 + $0x18] sm:$0xff]  ;;  %v81_v9 = vld [vmem:[#allocation5 + $0x18] sm:$0xff] }
  0x29   :  { %v118_v10 = vsub.f32 %v42_v4, %v80_v5  ;;  %v44_v11 = vld [vmem:[#allocation2 + $0x20] sm:$0xff]  ;;  %v82_v12 = vld [vmem:[#allocation5 + $0x20] sm:$0xff]  ;;  %v119_v13 = vsub.f32 %v43_v8, %v81_v9  ;;  %v45_v16 = vld [vmem:[#allocation2 + $0x28] sm:$0xff]  ;;  %p314_p4 = pnand %p312_p3, %p309_p2 }
  0x2a   :  { %v154_v14 = vmul.f32 %v116_v6, %v116_v6  ;;  %v155_v15 = vmul.f32 %v117_v7, %v117_v7  ;;  %v83_v17 = vld [vmem:[#allocation5 + $0x28] sm:$0xff]  ;;  %v120_v18 = vsub.f32 %v44_v11, %v82_v12  ;;  %v46_v20 = vld [vmem:[#allocation2 + $0x30] sm:$0xff]  ;;  %v84_v21 = vld [vmem:[#allocation5 + $0x30] sm:$0xff] }
  0x2b   :  { %v156_v19 = vmul.f32 %v118_v10, %v118_v10  ;;  %v121_v22 = vsub.f32 %v45_v16, %v83_v17  ;;  %v157_v23 = vmul.f32 %v119_v13, %v119_v13  ;;  %v47_v25 = vld [vmem:[#allocation2 + $0x38] sm:$0xff]  ;;  %v85_v26 = vld [vmem:[#allocation5 + $0x38] sm:$0xff]  ;;  %v122_v27 = vsub.f32 %v46_v20, %v84_v21  ;;  %v48_v30 = vld [vmem:[#allocation2 + $0x40] sm:$0xff] }
  0x2c   :  { %v192_v24 = vadd.f32 %v155_v15, %v154_v14  ;;  %v158_v28 = vmul.f32 %v120_v18, %v120_v18  ;;  %v86_v31 = vld [vmem:[#allocation5 + $0x40] sm:$0xff]  ;;  %v123_v32 = vsub.f32 %v47_v25, %v85_v26  ;;  %v49_v35 = vld [vmem:[#allocation2 + $0x48] sm:$0xff]  ;;  %v87_v36 = vld [vmem:[#allocation5 + $0x48] sm:$0xff] }
  0x2d   :  { %v159_v33 = vmul.f32 %v121_v22, %v121_v22  ;;  %v124_v37 = vsub.f32 %v48_v30, %v86_v31  ;;  %v160_v38 = vmul.f32 %v122_v27, %v122_v27  ;;  %v50_v40 = vld [vmem:[#allocation2 + $0x50] sm:$0xff]  ;;  %v88_v41 = vld [vmem:[#allocation5 + $0x50] sm:$0xff]  ;;  %v125_v42 = vsub.f32 %v49_v35, %v87_v36  ;;  %v51_v45 = vld [vmem:[#allocation2 + $0x58] sm:$0xff] }
  0x2e   :  { %v193_v29 = vadd.f32 %v192_v24, %v156_v19  ;;  %v161_v43 = vmul.f32 %v123_v32, %v123_v32  ;;  %v89_v46 = vld [vmem:[#allocation5 + $0x58] sm:$0xff]  ;;  %v126_v47 = vsub.f32 %v50_v40, %v88_v41  ;;  %v52_v50 = vld [vmem:[#allocation2 + $0x60] sm:$0xff]  ;;  %v90_v51 = vld [vmem:[#allocation5 + $0x60] sm:$0xff] }
  0x2f   :  { %v162_v48 = vmul.f32 %v124_v37, %v124_v37  ;;  %v127_v52 = vsub.f32 %v51_v45, %v89_v46  ;;  %v163_v53 = vmul.f32 %v125_v42, %v125_v42  ;;  %v53_v55 = vld [vmem:[#allocation2 + $0x68] sm:$0xff]  ;;  %v91_v56 = vld [vmem:[#allocation5 + $0x68] sm:$0xff]  ;;  %v128_v57 = vsub.f32 %v52_v50, %v90_v51  ;;  %v54_v60 = vld [vmem:[#allocation2 + $0x70] sm:$0xff] }
  0x30   :  { %v194_v34 = vadd.f32 %v193_v29, %v157_v23  ;;  %v164_v58 = vmul.f32 %v126_v47, %v126_v47  ;;  %v92_v61 = vld [vmem:[#allocation5 + $0x70] sm:$0xff]  ;;  %v129_v62 = vsub.f32 %v53_v55, %v91_v56  ;;  %v55_v1 = vld [vmem:[#allocation2 + $0x78] sm:$0xff]  ;;  %v93_v2 = vld [vmem:[#allocation5 + $0x78] sm:$0xff] }
  0x31   :  { %v165_v63 = vmul.f32 %v127_v52, %v127_v52  ;;  %v130_v3 = vsub.f32 %v54_v60, %v92_v61  ;;  %v166_v4 = vmul.f32 %v128_v57, %v128_v57  ;;  %v56_v6 = vld [vmem:[#allocation2 + $0x80] sm:$0xff]  ;;  %v94_v7 = vld [vmem:[#allocation5 + $0x80] sm:$0xff]  ;;  %v131_v8 = vsub.f32 %v55_v1, %v93_v2  ;;  %v57_v11 = vld [vmem:[#allocation2 + $0x88] sm:$0xff] }
  0x32   :  { %v195_v39 = vadd.f32 %v194_v34, %v158_v28  ;;  %v167_v9 = vmul.f32 %v129_v62, %v129_v62  ;;  %v95_v12 = vld [vmem:[#allocation5 + $0x88] sm:$0xff]  ;;  %v132_v13 = vsub.f32 %v56_v6, %v94_v7  ;;  %v58_v16 = vld [vmem:[#allocation2 + $0x90] sm:$0xff]  ;;  %v96_v17 = vld [vmem:[#allocation5 + $0x90] sm:$0xff] }
  0x33   :  { %v168_v14 = vmul.f32 %v130_v3, %v130_v3  ;;  %v133_v18 = vsub.f32 %v57_v11, %v95_v12  ;;  %v169_v19 = vmul.f32 %v131_v8, %v131_v8  ;;  %v59_v21 = vld [vmem:[#allocation2 + $0x98] sm:$0xff]  ;;  %v97_v22 = vld [vmem:[#allocation5 + $0x98] sm:$0xff]  ;;  %v134_v23 = vsub.f32 %v58_v16, %v96_v17  ;;  %v60_v26 = vld [vmem:[#allocation2 + $0xa0] sm:$0xff] }
  0x34   :  { %v196_v44 = vadd.f32 %v195_v39, %v159_v33  ;;  %v170_v24 = vmul.f32 %v132_v13, %v132_v13  ;;  %v98_v27 = vld [vmem:[#allocation5 + $0xa0] sm:$0xff]  ;;  %v135_v28 = vsub.f32 %v59_v21, %v97_v22  ;;  %v61_v31 = vld [vmem:[#allocation2 + $0xa8] sm:$0xff]  ;;  %v99_v32 = vld [vmem:[#allocation5 + $0xa8] sm:$0xff] }
  0x35   :  { %v171_v29 = vmul.f32 %v133_v18, %v133_v18  ;;  %v136_v33 = vsub.f32 %v60_v26, %v98_v27  ;;  %v172_v34 = vmul.f32 %v134_v23, %v134_v23  ;;  %v62_v36 = vld [vmem:[#allocation2 + $0xb0] sm:$0xff]  ;;  %v100_v37 = vld [vmem:[#allocation5 + $0xb0] sm:$0xff]  ;;  %v63_v41 = vld [vmem:[#allocation2 + $0xb8] sm:$0xff] }
  0x36   :  { %v197_v49 = vadd.f32 %v196_v44, %v160_v38  ;;  %v137_v38 = vsub.f32 %v61_v31, %v99_v32  ;;  %v173_v39 = vmul.f32 %v135_v28, %v135_v28  ;;  %v101_v42 = vld [vmem:[#allocation5 + $0xb8] sm:$0xff]  ;;  %v64_v46 = vld [vmem:[#allocation2 + $0xc0] sm:$0xff]  ;;  %v102_v47 = vld [vmem:[#allocation5 + $0xc0] sm:$0xff] }
  0x37   :  { %v174_v44 = vmul.f32 %v136_v33, %v136_v33  ;;  %v65_v51 = vld [vmem:[#allocation2 + $0xc8] sm:$0xff]  ;;  %v103_v52 = vld [vmem:[#allocation5 + $0xc8] sm:$0xff]  ;;  %v66_v56 = vld [vmem:[#allocation2 + $0xd0] sm:$0xff] }
  0x38   :  { %v198_v54 = vadd.f32 %v197_v49, %v161_v43  ;;  %v138_v43 = vsub.f32 %v62_v36, %v100_v37  ;;  %v175_v49 = vmul.f32 %v137_v38, %v137_v38  ;;  %v104_v57 = vld [vmem:[#allocation5 + $0xd0] sm:$0xff]  ;;  %v67_v61 = vld [vmem:[#allocation2 + $0xd8] sm:$0xff]  ;;  %v105_v62 = vld [vmem:[#allocation5 + $0xd8] sm:$0xff] }
  0x39   :  { %v68_v2 = vld [vmem:[#allocation2 + $0xe0] sm:$0xff]  ;;  %v106_v3 = vld [vmem:[#allocation5 + $0xe0] sm:$0xff]  ;;  %v69_v7 = vld [vmem:[#allocation2 + $0xe8] sm:$0xff] }
  0x3a   :  { %v199_v59 = vadd.f32 %v198_v54, %v162_v48  ;;  %v139_v48 = vsub.f32 %v63_v41, %v101_v42  ;;  %v176_v54 = vmul.f32 %v138_v43, %v138_v43  ;;  %v107_v8 = vld [vmem:[#allocation5 + $0xe8] sm:$0xff]  ;;  %v70_v12 = vld [vmem:[#allocation2 + $0xf0] sm:$0xff]  ;;  %v108_v13 = vld [vmem:[#allocation5 + $0xf0] sm:$0xff] }
  0x3b   :  { %v71_v17 = vld [vmem:[#allocation2 + $0xf8] sm:$0xff]  ;;  %v109_v18 = vld [vmem:[#allocation5 + $0xf8] sm:$0xff]  ;;  %v72_v22 = vld [vmem:[#allocation2 + $0x100] sm:$0xff] }
  0x3c   :  { %v200_v0 = vadd.f32 %v199_v59, %v163_v53  ;;  %v140_v53 = vsub.f32 %v64_v46, %v102_v47  ;;  %v177_v59 = vmul.f32 %v139_v48, %v139_v48  ;;  %v110_v23 = vld [vmem:[#allocation5 + $0x100] sm:$0xff]  ;;  %v73_v27 = vld [vmem:[#allocation2 + $0x108] sm:$0xff]  ;;  %v111_v28 = vld [vmem:[#allocation5 + $0x108] sm:$0xff] }
  0x3d   :  { %v74_v32 = vld [vmem:[#allocation2 + $0x110] sm:$0xff]  ;;  %v112_v33 = vld [vmem:[#allocation5 + $0x110] sm:$0xff]  ;;  %v75_v37 = vld [vmem:[#allocation2 + $0x118] sm:$0xff] }
  0x3e   :  { %v201_v5 = vadd.f32 %v200_v0, %v164_v58  ;;  %v141_v58 = vsub.f32 %v65_v51, %v103_v52  ;;  %v178_v0 = vmul.f32 %v140_v53, %v140_v53  ;;  %v113_v38 = vld [vmem:[#allocation5 + $0x118] sm:$0xff]  ;;  %v150_v41 = vsub.f32 %v74_v32, %v112_v33 }
  0x3f   :  { %v151_v46 = vsub.f32 %v75_v37, %v113_v38 }
  0x40   :  { %v202_v10 = vadd.f32 %v201_v5, %v165_v63  ;;  %v142_v63 = vsub.f32 %v66_v56, %v104_v57  ;;  %v179_v5 = vmul.f32 %v141_v58, %v141_v58  ;;  %v188_v51 = vmul.f32 %v150_v41, %v150_v41 }
  0x41   :  { %v189_v53 = vmul.f32 %v151_v46, %v151_v46 }
  0x42   :  { %v203_v15 = vadd.f32 %v202_v10, %v166_v4  ;;  %v143_v4 = vsub.f32 %v67_v61, %v105_v62  ;;  %v180_v10 = vmul.f32 %v142_v63, %v142_v63 }
  0x44   :  { %v204_v20 = vadd.f32 %v203_v15, %v167_v9  ;;  %v144_v9 = vsub.f32 %v68_v2, %v106_v3  ;;  %v181_v15 = vmul.f32 %v143_v4, %v143_v4 }
  0x46   :  { %v205_v25 = vadd.f32 %v204_v20, %v168_v14  ;;  %v145_v14 = vsub.f32 %v69_v7, %v107_v8  ;;  %v182_v20 = vmul.f32 %v144_v9, %v144_v9 }
  0x48   :  { %v206_v30 = vadd.f32 %v205_v25, %v169_v19  ;;  %v146_v19 = vsub.f32 %v70_v12, %v108_v13  ;;  %v183_v25 = vmul.f32 %v145_v14, %v145_v14 }
  0x4a   :  { %v207_v35 = vadd.f32 %v206_v30, %v170_v24  ;;  %v147_v24 = vsub.f32 %v71_v17, %v109_v18  ;;  %v184_v30 = vmul.f32 %v146_v19, %v146_v19 }
  0x4c   :  { %v208_v40 = vadd.f32 %v207_v35, %v171_v29  ;;  %v148_v29 = vsub.f32 %v72_v22, %v110_v23  ;;  %v185_v35 = vmul.f32 %v147_v24, %v147_v24 }
  0x4e   :  { %v209_v45 = vadd.f32 %v208_v40, %v172_v34  ;;  %v149_v34 = vsub.f32 %v73_v27, %v111_v28  ;;  %v115_v40 = vld [vmem:[#allocation5 + $0x128] sm:$0xf]  ;;  %v186_v42 = vmul.f32 %v148_v29, %v148_v29 }
  0x50   :  { %v210_v50 = vadd.f32 %v209_v45, %v173_v39  ;;  %v77_v39 = vld [vmem:[#allocation2 + $0x128] sm:$0xf]  ;;  %v114_v45 = vld [vmem:[#allocation5 + $0x120] sm:$0xff]  ;;  %v187_v47 = vmul.f32 %v149_v34, %v149_v34 }
  0x52   :  { %v211_v55 = vadd.f32 %v210_v50, %v174_v44  ;;  %v76_v44 = vld [vmem:[#allocation2 + $0x120] sm:$0xff] }
  0x53   :  { %v152_v50 = vsub.f32 %v76_v44, %v114_v45 }
  0x54   :  { %v212_v60 = vadd.f32 %v211_v55, %v175_v49  ;;  %v153_v49 = vsub.f32 %v77_v39, %v115_v40 }
  0x55   :  { %v190_v56 = vmul.f32 %v152_v50, %v152_v50 }
  0x56   :  { %v213_v1 = vadd.f32 %v212_v60, %v176_v54  ;;  %v191_v55 = vmul.f32 %v153_v49, %v153_v49 }
  0x58   :  { %v214_v6 = vadd.f32 %v213_v1, %v177_v59  ;;  %v229_v59 = vsel %vm228_vm0, %v191_v55, 0.0 }
  0x5a   :  { %v215_v11 = vadd.f32 %v214_v6, %v178_v0 }
  0x5c   :  { %v216_v16 = vadd.f32 %v215_v11, %v179_v5 }
  0x5e   :  { %v217_v21 = vadd.f32 %v216_v16, %v180_v10 }
  0x60   :  { %v218_v26 = vadd.f32 %v217_v21, %v181_v15 }
  0x62   :  { %v219_v31 = vadd.f32 %v218_v26, %v182_v20 }
  0x64   :  { %v220_v36 = vadd.f32 %v219_v31, %v183_v25 }
  0x66   :  { %v221_v43 = vadd.f32 %v220_v36, %v184_v30 }
  0x68   :  { %v222_v48 = vadd.f32 %v221_v43, %v185_v35 }
  0x6a   :  { %v223_v52 = vadd.f32 %v222_v48, %v186_v42 }
  0x6c   :  { %v224_v54 = vadd.f32 %v223_v52, %v187_v47 }
  0x6e   :  { %v225_v57 = vadd.f32 %v224_v54, %v188_v51 }
  0x70   :  { %v226_v58 = vadd.f32 %v225_v57, %v189_v53 }
  0x72   :  { %v227_v60 = vadd.f32 %v226_v58, %v190_v56 }
  0x74   :  { %v230_v61 = vadd.f32 %v229_v59, %v227_v60 }
  0x76   :  { %231 = vadd.xlane.f32.xlu0 %v230_v61 }
 0x103   :  { %v232_v62 = vpop.xlane.xlu0 %231 }
 0x104   :  { %v233_v63 = vrot.slane %v232_v62, 4 }
 0x106   :  { %v234_v0 = vadd.f32 %v233_v63, %v232_v62 }
 0x108   :  { %v235_v1 = vrot.slane %v234_v0, 2 }
 0x10a   :  { %v236_v2 = vadd.f32 %v235_v1, %v234_v0 }
 0x10c   :  { %v237_v3 = vrot.slane %v236_v2, 1 }
 0x10e   :  { %v238_v4 = vadd.f32 %v237_v3, %v236_v2 }
 0x110   :  { %257 = vpush %v238_v4 }
 0x141   :  { %s258_s1 = spop %257 }
 0x142   :  { %241 = sst [smem:[#allocation7]] %s258_s1 }
 0x143   :  { %317 = shalt.err (!%p314_p4)
}
 0x144   :  { %s328_s13 = smov [#allocation7]  }
 0x145   :  { %249 = dma.smem_to_hbm %s328_s13, 16, %s382_s2, [#allocation4]  }
 0x146   :  { %322 = dma.done.wait [#allocation4], 16  }
 0x147   :  { %323 = vsyncadd [#allocation4], 4294967280 }
 0x148   :  { %253 = sfence }
 0x149   :  { %254 = vsyncpa [#allocation3], 1 }
 0x14a   :  { %255 = vsyncpa [#allocation6], 1 }
 0x14b   :  { %256 = vsyncpa [#allocation4], 1 }

</bundles_post_ra>
